<compile_context>
chip_gen: v7x
topology: tpu7x:2x2x1
jax: 0.10.0
libtpu: 0.0.40
codegen_flags: <defaults>
</compile_context>

<pallas_src>
import functools

import jax
import jax.numpy as jnp
import numpy as np
from jax.experimental import pallas as pl
from jax.experimental.pallas import tpu as pltpu


def _gelu(x):
    return jax.nn.gelu(x, approximate=True)


def _forecast_kernel(h0_ref, k_ref, wglu_ref, bglu_ref, ln_ref,
                     out_ref, h_ref, *, lt, mm_dtype):
    li = pl.program_id(1)
    n_layers = pl.num_programs(1)
    bt, seq, d = h_ref.shape
    nb = seq // lt

    # First layer step of each batch block: load the encoded input into the
    # activation scratch carried across the layer grid axis.
    @pl.when(li == 0)
    def _():
        h_ref[...] = h0_ref[...]

    u = h_ref[...]                                       # (bt, seq, d) f32
    k = k_ref[...]                                       # (seq, d) conv taps

    # ---- causal depthwise conv  y[b,t,:] = sum_tau K[tau] * u[b,t-tau,:] ----
    # Blocked over output-time blocks (ti) and lag blocks (g); the only live
    # intermediate is one (bt, lt, d) tile.
    zeros_blk = jnp.zeros((bt, lt, d), jnp.float32)
    y_blocks = []
    for ti in range(nb):
        acc = zeros_blk
        for g in range(ti + 1):                          # lag block; si = ti-g
            si = ti - g
            left = zeros_blk if si == 0 else u[:, (si - 1) * lt:si * lt, :]
            right = u[:, si * lt:(si + 1) * lt, :]
            upair = jnp.concatenate([left, right], axis=1)   # (bt, 2*lt, d)
            for j in range(lt):                          # lag within the block
                tap = k[g * lt + j:g * lt + j + 1, :]    # (1, d)
                acc = acc + tap * upair[:, lt - j:2 * lt - j, :]
        y_blocks.append(acc)
    y = y_blocks[0] if nb == 1 else jnp.concatenate(y_blocks, axis=1)
    y = _gelu(y)                                         # (bt, seq, d)

    # ---- GLU output projection: two MXU dots sharing the LHS ---------------
    y2 = y.reshape(bt * seq, d).astype(mm_dtype)
    a = jnp.dot(y2, wglu_ref[0].astype(mm_dtype),
                preferred_element_type=jnp.float32) + bglu_ref[0:1, :]
    gate = jnp.dot(y2, wglu_ref[1].astype(mm_dtype),
                   preferred_element_type=jnp.float32) + bglu_ref[1:2, :]
    glu = (a * jax.nn.sigmoid(gate)).reshape(bt, seq, d)

    # ---- residual + LayerNorm (eps = 1e-5, PyTorch default) ----------------
    z = u + glu
    mu = jnp.mean(z, axis=-1, keepdims=True)
    var = jnp.mean((z - mu) ** 2, axis=-1, keepdims=True)
    h_new = ((z - mu) * jax.lax.rsqrt(var + 1e-5) * ln_ref[0:1, :]
             + ln_ref[1:2, :])
    h_ref[...] = h_new

    # ---- after the last layer: emit lane-dense (bt, d) last-timestep slab --
    @pl.when(li == n_layers - 1)
    def _():
        out_ref[...] = h_new[:, seq - 1, :]


def _pack_params(params, L):
    """Parameter-only precompute (pure JAX, done once in the wrapper)."""
    (w_enc, b_enc, dA, dB, C, Dsk, Wout, bout, gamma, beta, w_dec, b_dec) = params
    # Conv taps K[li, tau, d] = sum_n C*dB*dA^tau ; fold the D-skip into tau=0.
    taus = jnp.arange(L, dtype=jnp.float32)
    dA_pow = dA[:, None, :, :] ** taus[None, :, None, None]     # (nl, L, D, N)
    K = jnp.sum(C[:, None] * dB[:, None] * dA_pow, axis=-1)     # (nl, L, D)
    K = K.at[:, 0, :].add(Dsk)
    ln = jnp.stack([gamma, beta], axis=1)                       # (nl, 2, D)
    return (K.astype(jnp.float32), Wout.astype(jnp.float32),
            bout.astype(jnp.float32), ln.astype(jnp.float32))


def forecast_pallas(x, params):
    w_enc, b_enc = params[0], params[1]
    w_dec, b_dec = params[10], params[11]
    B, L, _ = x.shape
    K, Wout, bout, ln = _pack_params(params, L)
    n_layers, _, D = K.shape

    # Encoder Linear(1, D): a parameter broadcast, done by XLA -> lane-dense
    # (B, L, D) slab (no (..., 1) lane-sparse buffer is shipped to the kernel).
    h0 = (x.astype(jnp.float32) * w_enc + b_enc)                 # (B, L, D)

    Bt = B if B % 8 else min(B, 8)   # batch block (multiple of 8 at prod sizes)
    num_b = B // Bt
    lt = L if L <= 128 else 128      # time tile (multiple of 8)
    mm_dtype = jnp.bfloat16 if D >= 128 else jnp.float32

    kernel = functools.partial(_forecast_kernel, lt=lt, mm_dtype=mm_dtype)

    in_specs = [
        pl.BlockSpec((Bt, L, D), lambda b, li: (b, 0, 0)),            # h0
        pl.BlockSpec((None, L, D), lambda b, li: (li, 0, 0)),         # K[li]
        pl.BlockSpec((None, 2, D, D), lambda b, li: (li, 0, 0, 0)),   # Wglu[li]
        pl.BlockSpec((None, 2, D), lambda b, li: (li, 0, 0)),         # bglu[li]
        pl.BlockSpec((None, 2, D), lambda b, li: (li, 0, 0)),         # ln[li]
    ]
    out_specs = pl.BlockSpec((Bt, D), lambda b, li: (b, 0))

    # VMEM budget from actual buffer sizes (x2 for double buffering) + scratch
    # + headroom; capped well below the 64 MiB physical VMEM of v7x.
    blk = 4 * (Bt * L * D + L * D + 2 * D * D + 2 * D + 2 * D + Bt * D)
    vmem_limit = int(min(48 << 20,
                         max(16 << 20, 2 * blk + 4 * Bt * L * D + (2 << 20))))

    h_last = pl.pallas_call(
        kernel,
        out_shape=jax.ShapeDtypeStruct((B, D), jnp.float32),
        grid_spec=pltpu.PrefetchScalarGridSpec(
            num_scalar_prefetch=0,
            grid=(num_b, n_layers),
            in_specs=in_specs,
            out_specs=out_specs,
            scratch_shapes=[pltpu.VMEM((Bt, L, D), jnp.float32)]),
        compiler_params=pltpu.CompilerParams(
            dimension_semantics=("parallel", "arbitrary"),
            vmem_limit_bytes=vmem_limit),
    )(h0, K, Wout, bout, ln)

    # Decoder Linear(D, 1) on the lane-dense (B, D) slab (outside the kernel).
    return jnp.sum(h_last * w_dec, axis=-1, keepdims=True) + b_dec


def init_params(key, d_model=32, n_layers=2, d_state=16):
    D, N = d_model, d_state
    ks = jax.random.split(key, 10)
    w_enc = jax.random.normal(ks[0], (1, D), jnp.float32) * 0.5
    b_enc = jax.random.normal(ks[1], (1, D), jnp.float32) * 0.1
    dA = jax.random.uniform(ks[2], (n_layers, D, N), jnp.float32, 0.5, 0.95)
    dB = jax.random.normal(ks[3], (n_layers, D, N), jnp.float32) * 0.2
    C = jax.random.normal(ks[4], (n_layers, D, N), jnp.float32) * 0.2
    Dsk = jax.random.normal(ks[5], (n_layers, D), jnp.float32)
    Wout = jax.random.normal(ks[6], (n_layers, 2, D, D), jnp.float32) / jnp.sqrt(D)
    bout = jax.random.normal(ks[7], (n_layers, 2, D), jnp.float32) * 0.1
    gamma = jnp.ones((n_layers, D), jnp.float32)
    beta = jnp.zeros((n_layers, D), jnp.float32)
    w_dec = jax.random.normal(ks[8], (1, D), jnp.float32) / jnp.sqrt(D)
    b_dec = jax.random.normal(ks[9], (1, 1), jnp.float32) * 0.1
    return (w_enc, b_enc, dA, dB, C, Dsk, Wout, bout, gamma, beta, w_dec, b_dec)


def forecast_ref(x, params):
    """Pure-JAX reference (step-recurrence form) with identical semantics."""
    (w_enc, b_enc, dA, dB, C, Dsk, Wout, bout, gamma, beta, w_dec, b_dec) = params
    B, L, _ = x.shape
    n_layers, D, N = dA.shape
    hp = jax.lax.Precision.HIGHEST
    h = x * w_enc + b_enc
    for li in range(n_layers):
        s = jnp.zeros((B, D, N), jnp.float32)
        ys = []
        for t in range(L):
            u_t = h[:, t, :]
            s = dA[li][None] * s + dB[li][None] * u_t[:, :, None]
            ys.append(jnp.sum(s * C[li][None], axis=-1) + Dsk[li] * u_t)
        y = _gelu(jnp.stack(ys, axis=1))
        yf = y.reshape(B * L, D)
        ya = jnp.dot(yf, Wout[li, 0], precision=hp) + bout[li, 0]
        yb = jnp.dot(yf, Wout[li, 1], precision=hp) + bout[li, 1]
        y = (ya * jax.nn.sigmoid(yb)).reshape(B, L, D)
        z = h + y
        mu = jnp.mean(z, axis=-1, keepdims=True)
        var = jnp.mean((z - mu) ** 2, axis=-1, keepdims=True)
        h = (z - mu) * jax.lax.rsqrt(var + 1e-5) * gamma[li] + beta[li]
    h_last = h[:, -1, :]
    return jnp.sum(h_last * w_dec, axis=-1, keepdims=True) + b_dec


if __name__ == "__main__":
    B, L, d_model, n_layers, d_state = 2, 8, 32, 2, 16
    key = jax.random.PRNGKey(0)
    kx, kp = jax.random.split(key)
    x = jax.random.normal(kx, (B, L, 1), jnp.float32)    # (batch, seq, 1)
    params = init_params(kp, d_model, n_layers, d_state)

    out = forecast_pallas(x, params)
    out = jax.block_until_ready(out)
    assert out.shape == (B, 1)

    ref = forecast_ref(x, params)
    np.testing.assert_allclose(np.asarray(out), np.asarray(ref),
                               rtol=1e-2, atol=1e-2)
    print("KERNEL_OK")
</pallas_src>

<mosaic_0001>
module attributes {stable_mosaic.version = 11 : i64} {
  func.func @_forecast_kernel(%arg0: i32, %arg1: i32, %arg2: memref<2x8x32xf32, #tpu.memory_space<vmem>>, %arg3: memref<1x8x32xf32, #tpu.memory_space<vmem>>, %arg4: memref<1x2x32x32xf32, #tpu.memory_space<vmem>>, %arg5: memref<1x2x32xf32, #tpu.memory_space<vmem>>, %arg6: memref<1x2x32xf32, #tpu.memory_space<vmem>>, %arg7: memref<2x32xf32, #tpu.memory_space<vmem>>, %arg8: memref<2x8x32xf32, #tpu.memory_space<vmem>>) attributes {dimension_semantics = [#tpu.dimension_semantics<parallel>, #tpu.dimension_semantics<arbitrary>], iteration_bounds = array<i64: 1, 2>, scalar_prefetch = 0 : i64, scratch_operands = 1 : i64, tpu.core_type = #tpu.core_type<tc>, window_params = [{transform_indices = @transform_0, window_bounds = array<i64: 2, 8, 32>}, {transform_indices = @transform_1, window_bounds = array<i64: 1, 8, 32>}, {transform_indices = @transform_2, window_bounds = array<i64: 1, 2, 32, 32>}, {transform_indices = @transform_3, window_bounds = array<i64: 1, 2, 32>}, {transform_indices = @transform_4, window_bounds = array<i64: 1, 2, 32>}, {transform_indices = @transform_5, window_bounds = array<i64: 2, 32>}]} {
    %c0_i32 = arith.constant 0 : i32
    %0 = arith.cmpi eq, %arg1, %c0_i32 : i32
    %1 = arith.extui %0 : i1 to i32
    %c0_i32_0 = arith.constant 0 : i32
    %2 = arith.cmpi ne, %1, %c0_i32_0 : i32
    scf.if %2 {
      %c0_41 = arith.constant 0 : index
      %c0_42 = arith.constant 0 : index
      %c0_43 = arith.constant 0 : index
      %124 = vector.load %arg2[%c0_41, %c0_42, %c0_43] : memref<2x8x32xf32, #tpu.memory_space<vmem>>, vector<2x8x32xf32>
      %c0_44 = arith.constant 0 : index
      %c0_45 = arith.constant 0 : index
      %c0_46 = arith.constant 0 : index
      %125 = vector.load %arg8[%c0_44, %c0_45, %c0_46] : memref<2x8x32xf32, #tpu.memory_space<vmem>>, vector<2x8x32xf32>
      tpu.vector_store %arg8[%c0_44, %c0_45, %c0_46], %124 {strides = array<i32>} : memref<2x8x32xf32, #tpu.memory_space<vmem>>, vector<2x8x32xf32>,
    } else {
    }
    %c0 = arith.constant 0 : index
    %c0_1 = arith.constant 0 : index
    %c0_2 = arith.constant 0 : index
    %3 = vector.load %arg8[%c0, %c0_1, %c0_2] : memref<2x8x32xf32, #tpu.memory_space<vmem>>, vector<2x8x32xf32>
    %c0_3 = arith.constant 0 : index
    %c0_4 = arith.constant 0 : index
    %c0_5 = arith.constant 0 : index
    %4 = vector.load %arg3[%c0_3, %c0_4, %c0_5] : memref<1x8x32xf32, #tpu.memory_space<vmem>>, vector<1x8x32xf32>
    %5 = vector.shape_cast %4 : vector<1x8x32xf32> to vector<8x32xf32>
    %cst = arith.constant 0.000000e+00 : f32
    %6 = vector.broadcast %cst : f32 to vector<2x8x32xf32>
    %7 = tpu.concatenate %6, %3 in 1 : vector<2x8x32xf32>, vector<2x8x32xf32> -> vector<2x16x32xf32>
    %8 = vector.extract_strided_slice %5 {offsets = [0, 0], sizes = [1, 32], strides = [1, 1]} : vector<8x32xf32> to vector<1x32xf32>
    %9 = vector.extract_strided_slice %7 {offsets = [0, 8, 0], sizes = [2, 8, 32], strides = [1, 1, 1]} : vector<2x16x32xf32> to vector<2x8x32xf32>
    %10 = vector.shape_cast %8 : vector<1x32xf32> to vector<1x1x32xf32>
    %11 = vector.broadcast %10 : vector<1x1x32xf32> to vector<2x8x32xf32>
    %12 = arith.mulf %11, %9 : vector<2x8x32xf32>
    %13 = arith.addf %6, %12 : vector<2x8x32xf32>
    %14 = vector.extract_strided_slice %5 {offsets = [1, 0], sizes = [1, 32], strides = [1, 1]} : vector<8x32xf32> to vector<1x32xf32>
    %15 = vector.extract_strided_slice %7 {offsets = [0, 7, 0], sizes = [2, 8, 32], strides = [1, 1, 1]} : vector<2x16x32xf32> to vector<2x8x32xf32>
    %16 = vector.shape_cast %14 : vector<1x32xf32> to vector<1x1x32xf32>
    %17 = vector.broadcast %16 : vector<1x1x32xf32> to vector<2x8x32xf32>
    %18 = arith.mulf %17, %15 : vector<2x8x32xf32>
    %19 = arith.addf %13, %18 : vector<2x8x32xf32>
    %20 = vector.extract_strided_slice %5 {offsets = [2, 0], sizes = [1, 32], strides = [1, 1]} : vector<8x32xf32> to vector<1x32xf32>
    %21 = vector.extract_strided_slice %7 {offsets = [0, 6, 0], sizes = [2, 8, 32], strides = [1, 1, 1]} : vector<2x16x32xf32> to vector<2x8x32xf32>
    %22 = vector.shape_cast %20 : vector<1x32xf32> to vector<1x1x32xf32>
    %23 = vector.broadcast %22 : vector<1x1x32xf32> to vector<2x8x32xf32>
    %24 = arith.mulf %23, %21 : vector<2x8x32xf32>
    %25 = arith.addf %19, %24 : vector<2x8x32xf32>
    %26 = vector.extract_strided_slice %5 {offsets = [3, 0], sizes = [1, 32], strides = [1, 1]} : vector<8x32xf32> to vector<1x32xf32>
    %27 = vector.extract_strided_slice %7 {offsets = [0, 5, 0], sizes = [2, 8, 32], strides = [1, 1, 1]} : vector<2x16x32xf32> to vector<2x8x32xf32>
    %28 = vector.shape_cast %26 : vector<1x32xf32> to vector<1x1x32xf32>
    %29 = vector.broadcast %28 : vector<1x1x32xf32> to vector<2x8x32xf32>
    %30 = arith.mulf %29, %27 : vector<2x8x32xf32>
    %31 = arith.addf %25, %30 : vector<2x8x32xf32>
    %32 = vector.extract_strided_slice %5 {offsets = [4, 0], sizes = [1, 32], strides = [1, 1]} : vector<8x32xf32> to vector<1x32xf32>
    %33 = vector.extract_strided_slice %7 {offsets = [0, 4, 0], sizes = [2, 8, 32], strides = [1, 1, 1]} : vector<2x16x32xf32> to vector<2x8x32xf32>
    %34 = vector.shape_cast %32 : vector<1x32xf32> to vector<1x1x32xf32>
    %35 = vector.broadcast %34 : vector<1x1x32xf32> to vector<2x8x32xf32>
    %36 = arith.mulf %35, %33 : vector<2x8x32xf32>
    %37 = arith.addf %31, %36 : vector<2x8x32xf32>
    %38 = vector.extract_strided_slice %5 {offsets = [5, 0], sizes = [1, 32], strides = [1, 1]} : vector<8x32xf32> to vector<1x32xf32>
    %39 = vector.extract_strided_slice %7 {offsets = [0, 3, 0], sizes = [2, 8, 32], strides = [1, 1, 1]} : vector<2x16x32xf32> to vector<2x8x32xf32>
    %40 = vector.shape_cast %38 : vector<1x32xf32> to vector<1x1x32xf32>
    %41 = vector.broadcast %40 : vector<1x1x32xf32> to vector<2x8x32xf32>
    %42 = arith.mulf %41, %39 : vector<2x8x32xf32>
    %43 = arith.addf %37, %42 : vector<2x8x32xf32>
    %44 = vector.extract_strided_slice %5 {offsets = [6, 0], sizes = [1, 32], strides = [1, 1]} : vector<8x32xf32> to vector<1x32xf32>
    %45 = vector.extract_strided_slice %7 {offsets = [0, 2, 0], sizes = [2, 8, 32], strides = [1, 1, 1]} : vector<2x16x32xf32> to vector<2x8x32xf32>
    %46 = vector.shape_cast %44 : vector<1x32xf32> to vector<1x1x32xf32>
    %47 = vector.broadcast %46 : vector<1x1x32xf32> to vector<2x8x32xf32>
    %48 = arith.mulf %47, %45 : vector<2x8x32xf32>
    %49 = arith.addf %43, %48 : vector<2x8x32xf32>
    %50 = vector.extract_strided_slice %5 {offsets = [7, 0], sizes = [1, 32], strides = [1, 1]} : vector<8x32xf32> to vector<1x32xf32>
    %51 = vector.extract_strided_slice %7 {offsets = [0, 1, 0], sizes = [2, 8, 32], strides = [1, 1, 1]} : vector<2x16x32xf32> to vector<2x8x32xf32>
    %52 = vector.shape_cast %50 : vector<1x32xf32> to vector<1x1x32xf32>
    %53 = vector.broadcast %52 : vector<1x1x32xf32> to vector<2x8x32xf32>
    %54 = arith.mulf %53, %51 : vector<2x8x32xf32>
    %55 = arith.addf %49, %54 : vector<2x8x32xf32>
    %56 = arith.mulf %55, %55 : vector<2x8x32xf32>
    %57 = arith.mulf %55, %56 : vector<2x8x32xf32>
    %cst_6 = arith.constant 4.471500e-02 : f32
    %58 = vector.broadcast %cst_6 : f32 to vector<2x8x32xf32>
    %59 = arith.mulf %58, %57 : vector<2x8x32xf32>
    %60 = arith.addf %55, %59 : vector<2x8x32xf32>
    %cst_7 = arith.constant 0.797884583 : f32
    %61 = vector.broadcast %cst_7 : f32 to vector<2x8x32xf32>
    %62 = arith.mulf %61, %60 : vector<2x8x32xf32>
    %63 = math.tanh %62 : vector<2x8x32xf32>
    %cst_8 = arith.constant 1.000000e+00 : f32
    %64 = vector.broadcast %cst_8 : f32 to vector<2x8x32xf32>
    %65 = arith.addf %64, %63 : vector<2x8x32xf32>
    %cst_9 = arith.constant 5.000000e-01 : f32
    %66 = vector.broadcast %cst_9 : f32 to vector<2x8x32xf32>
    %67 = arith.mulf %66, %65 : vector<2x8x32xf32>
    %68 = arith.mulf %55, %67 : vector<2x8x32xf32>
    %69 = vector.shape_cast %68 : vector<2x8x32xf32> to vector<16x32xf32>
    %c0_10 = arith.constant 0 : index
    %c0_11 = arith.constant 0 : index
    %c0_12 = arith.constant 0 : index
    %c0_13 = arith.constant 0 : index
    %70 = vector.load %arg4[%c0_10, %c0_11, %c0_12, %c0_13] : memref<1x2x32x32xf32, #tpu.memory_space<vmem>>, vector<1x1x32x32xf32>
    %71 = vector.shape_cast %70 : vector<1x1x32x32xf32> to vector<32x32xf32>
    %cst_14 = arith.constant dense<0.000000e+00> : vector<16x32xf32>
    %72 = tpu.matmul %69, %71, %cst_14 {dimension_numbers = #tpu.dot_dimension_numbers<[1], [0], [0], [1], [0, 0, 1, 1], [], []>} : vector<16x32xf32>, vector<32x32xf32>, vector<16x32xf32> -> vector<16x32xf32>
    %c0_15 = arith.constant 0 : index
    %c0_16 = arith.constant 0 : index
    %c0_17 = arith.constant 0 : index
    %73 = vector.load %arg5[%c0_15, %c0_16, %c0_17] : memref<1x2x32xf32, #tpu.memory_space<vmem>>, vector<1x1x32xf32>
    %74 = vector.shape_cast %73 : vector<1x1x32xf32> to vector<1x32xf32>
    %75 = vector.broadcast %74 : vector<1x32xf32> to vector<16x32xf32>
    %76 = arith.addf %72, %75 : vector<16x32xf32>
    %c0_18 = arith.constant 0 : index
    %c1 = arith.constant 1 : index
    %c0_19 = arith.constant 0 : index
    %c0_20 = arith.constant 0 : index
    %77 = vector.load %arg4[%c0_18, %c1, %c0_19, %c0_20] : memref<1x2x32x32xf32, #tpu.memory_space<vmem>>, vector<1x1x32x32xf32>
    %78 = vector.shape_cast %77 : vector<1x1x32x32xf32> to vector<32x32xf32>
    %cst_21 = arith.constant dense<0.000000e+00> : vector<16x32xf32>
    %79 = tpu.matmul %69, %78, %cst_21 {dimension_numbers = #tpu.dot_dimension_numbers<[1], [0], [0], [1], [0, 0, 1, 1], [], []>} : vector<16x32xf32>, vector<32x32xf32>, vector<16x32xf32> -> vector<16x32xf32>
    %c0_22 = arith.constant 0 : index
    %c1_23 = arith.constant 1 : index
    %c0_24 = arith.constant 0 : index
    %80 = vector.load %arg5[%c0_22, %c1_23, %c0_24] : memref<1x2x32xf32, #tpu.memory_space<vmem>>, vector<1x1x32xf32>
    %81 = vector.shape_cast %80 : vector<1x1x32xf32> to vector<1x32xf32>
    %82 = vector.broadcast %81 : vector<1x32xf32> to vector<16x32xf32>
    %83 = arith.addf %79, %82 : vector<16x32xf32>
    %84 = arith.negf %83 : vector<16x32xf32>
    %85 = math.exp %84 : vector<16x32xf32>
    %cst_25 = arith.constant 1.000000e+00 : f32
    %86 = vector.broadcast %cst_25 : f32 to vector<16x32xf32>
    %87 = arith.addf %86, %85 : vector<16x32xf32>
    %88 = arith.divf %86, %87 : vector<16x32xf32>
    %89 = arith.mulf %76, %88 : vector<16x32xf32>
    %90 = vector.shape_cast %89 : vector<16x32xf32> to vector<2x8x32xf32>
    %91 = arith.addf %3, %90 : vector<2x8x32xf32>
    %cst_26 = arith.constant dense<0.000000e+00> : vector<2x8xf32>
    %92 = vector.multi_reduction <add>, %91, %cst_26 [2] : vector<2x8x32xf32> to vector<2x8xf32>
    %93 = vector.shape_cast %92 : vector<2x8xf32> to vector<2x8x1xf32>
    %cst_27 = arith.constant 3.200000e+01 : f32
    %94 = vector.broadcast %cst_27 : f32 to vector<2x8x1xf32>
    %95 = arith.divf %93, %94 : vector<2x8x1xf32>
    %96 = vector.broadcast %95 : vector<2x8x1xf32> to vector<2x8x32xf32>
    %97 = arith.subf %91, %96 : vector<2x8x32xf32>
    %98 = arith.mulf %97, %97 : vector<2x8x32xf32>
    %cst_28 = arith.constant dense<0.000000e+00> : vector<2x8xf32>
    %99 = vector.multi_reduction <add>, %98, %cst_28 [2] : vector<2x8x32xf32> to vector<2x8xf32>
    %100 = vector.shape_cast %99 : vector<2x8xf32> to vector<2x8x1xf32>
    %cst_29 = arith.constant 3.200000e+01 : f32
    %101 = vector.broadcast %cst_29 : f32 to vector<2x8x1xf32>
    %102 = arith.divf %100, %101 : vector<2x8x1xf32>
    %103 = vector.broadcast %95 : vector<2x8x1xf32> to vector<2x8x32xf32>
    %104 = arith.subf %91, %103 : vector<2x8x32xf32>
    %cst_30 = arith.constant 9.99999974E-6 : f32
    %105 = vector.broadcast %cst_30 : f32 to vector<2x8x1xf32>
    %106 = arith.addf %102, %105 : vector<2x8x1xf32>
    %107 = math.rsqrt %106 : vector<2x8x1xf32>
    %108 = vector.broadcast %107 : vector<2x8x1xf32> to vector<2x8x32xf32>
    %109 = arith.mulf %104, %108 : vector<2x8x32xf32>
    %c0_31 = arith.constant 0 : index
    %c0_32 = arith.constant 0 : index
    %c0_33 = arith.constant 0 : index
    %110 = vector.load %arg6[%c0_31, %c0_32, %c0_33] : memref<1x2x32xf32, #tpu.memory_space<vmem>>, vector<1x1x32xf32>
    %111 = vector.shape_cast %110 : vector<1x1x32xf32> to vector<1x32xf32>
    %112 = vector.shape_cast %111 : vector<1x32xf32> to vector<1x1x32xf32>
    %113 = vector.broadcast %112 : vector<1x1x32xf32> to vector<2x8x32xf32>
    %114 = arith.mulf %109, %113 : vector<2x8x32xf32>
    %c0_34 = arith.constant 0 : index
    %c1_35 = arith.constant 1 : index
    %c0_36 = arith.constant 0 : index
    %115 = vector.load %arg6[%c0_34, %c1_35, %c0_36] : memref<1x2x32xf32, #tpu.memory_space<vmem>>, vector<1x1x32xf32>
    %116 = vector.shape_cast %115 : vector<1x1x32xf32> to vector<1x32xf32>
    %117 = vector.shape_cast %116 : vector<1x32xf32> to vector<1x1x32xf32>
    %118 = vector.broadcast %117 : vector<1x1x32xf32> to vector<2x8x32xf32>
    %119 = arith.addf %114, %118 : vector<2x8x32xf32>
    %c0_37 = arith.constant 0 : index
    %c0_38 = arith.constant 0 : index
    %c0_39 = arith.constant 0 : index
    %120 = vector.load %arg8[%c0_37, %c0_38, %c0_39] : memref<2x8x32xf32, #tpu.memory_space<vmem>>, vector<2x8x32xf32>
    tpu.vector_store %arg8[%c0_37, %c0_38, %c0_39], %119 {strides = array<i32>} : memref<2x8x32xf32, #tpu.memory_space<vmem>>, vector<2x8x32xf32>,
    %c1_i32 = arith.constant 1 : i32
    %121 = arith.cmpi eq, %arg1, %c1_i32 : i32
    %122 = arith.extui %121 : i1 to i32
    %c0_i32_40 = arith.constant 0 : i32
    %123 = arith.cmpi ne, %122, %c0_i32_40 : i32
    scf.if %123 {
      %124 = vector.extract_strided_slice %119 {offsets = [0, 7, 0], sizes = [2, 1, 32], strides = [1, 1, 1]} : vector<2x8x32xf32> to vector<2x1x32xf32>
      %125 = vector.shape_cast %124 : vector<2x1x32xf32> to vector<2x32xf32>
      %c0_41 = arith.constant 0 : index
      %c0_42 = arith.constant 0 : index
      %126 = vector.load %arg7[%c0_41, %c0_42] : memref<2x32xf32, #tpu.memory_space<vmem>>, vector<2x32xf32>
      tpu.vector_store %arg7[%c0_41, %c0_42], %125 {strides = array<i32>} : memref<2x32xf32, #tpu.memory_space<vmem>>, vector<2x32xf32>,
    } else {
    }
    return
  }
  func.func @transform_0(%arg0: i32, %arg1: i32) -> (i32, i32, i32) {
    %c0_i32 = arith.constant 0 : i32
    %c0_i32_0 = arith.constant 0 : i32
    %c0_i32_1 = arith.constant 0 : i32
    return %arg0, %c0_i32, %c0_i32_0 : i32, i32, i32
  }
  func.func @transform_1(%arg0: i32, %arg1: i32) -> (i32, i32, i32) {
    %c0_i32 = arith.constant 0 : i32
    %c0_i32_0 = arith.constant 0 : i32
    %c0_i32_1 = arith.constant 0 : i32
    return %arg1, %c0_i32, %c0_i32_0 : i32, i32, i32
  }
  func.func @transform_2(%arg0: i32, %arg1: i32) -> (i32, i32, i32, i32) {
    %c0_i32 = arith.constant 0 : i32
    %c0_i32_0 = arith.constant 0 : i32
    %c0_i32_1 = arith.constant 0 : i32
    %c0_i32_2 = arith.constant 0 : i32
    return %arg1, %c0_i32, %c0_i32_0, %c0_i32_1 : i32, i32, i32, i32
  }
  func.func @transform_3(%arg0: i32, %arg1: i32) -> (i32, i32, i32) {
    %c0_i32 = arith.constant 0 : i32
    %c0_i32_0 = arith.constant 0 : i32
    %c0_i32_1 = arith.constant 0 : i32
    return %arg1, %c0_i32, %c0_i32_0 : i32, i32, i32
  }
  func.func @transform_4(%arg0: i32, %arg1: i32) -> (i32, i32, i32) {
    %c0_i32 = arith.constant 0 : i32
    %c0_i32_0 = arith.constant 0 : i32
    %c0_i32_1 = arith.constant 0 : i32
    return %arg1, %c0_i32, %c0_i32_0 : i32, i32, i32
  }
  func.func @transform_5(%arg0: i32, %arg1: i32) -> (i32, i32) {
    %c0_i32 = arith.constant 0 : i32
    %c0_i32_0 = arith.constant 0 : i32
    return %arg0, %c0_i32 : i32, i32
  }
}

</mosaic_0001>

<bundles_post_ra>
// kernel: tpu_custom_call.1
= control target key start
LH: loop header
LB: loop body
LE: loop exit
PB: predicated region body
PF: predicated region fallthrough
CT: control target
= control target key end

     0   :  { %s1585_s0 = inlined_call_operand.hbm [shape: f32[2,8,32], index: 0, kind: input, shape index: {}]   ;;  %s1586_s1 = inlined_call_operand.hbm [shape: f32[2,8,32], index: 1, kind: input, shape index: {}]   ;;  %s1587_s2 = inlined_call_operand.hbm [shape: f32[2,2,32,32], index: 2, kind: input, shape index: {}]   ;;  %s1588_s3 = inlined_call_operand.vmem [shape: f32[2,2,32], index: 3, kind: input, shape index: {}]   ;;  %s1589_s4 = inlined_call_operand.vmem [shape: f32[2,2,32], index: 4, kind: input, shape index: {}]   ;;  %s1590_s5 = inlined_call_operand.hbm [shape: f32[2,32], index: 5, kind: output, shape index: {}]  }
   0x1   :  { %1594 = sst [smem:[#allocation13_spill]] %s1586_s1 }
   0x2   :  { %10 = vsyncpa [#allocation4], 0 }
   0x3   :  { %11 = vsyncpa [#allocation7], 0 }
   0x4   :  { %13 = vsyncpa [#allocation7 + $0x1], 0 }
   0x5   :  { %14 = vsyncpa [#allocation5], 0  ;;  %s1286_s18 = smov 0   ;;  %s1288_s19 = smov 0  }
   0x6   :  { %s1290_s20 = smov 0   ;;  %s1292_s21 = smov 0  }
   0x7   :  { %s1294_s22 = smov 0   ;;  %s1296_s23 = smov 0  }
   0x8 LB: > { %s29_s24 = sadd.s32 1, %s1244_s22  ;;  %s65_s25 = sadd.s32 1, %s1236_s20  ;;  %s1248_s23 = sphi %s1296_s23, %s20_s23   ;;  %s1244_s22 = sphi %s1294_s22, %s1608_s22   ;;  %s1240_s21 = sphi %s1292_s21, %s1607_s21   ;;  %s1236_s20 = sphi %s1290_s20, %s1606_s20   ;;  %s1232_s19 = sphi %s1288_s19, %s1605_s19   ;;  %s1228_s18 = sphi %s1286_s18, %s1604_s18  }
   0x9   : > { %p30_p0 = scmp.ge.s32.totalorder %s29_s24, 2  ;;  %p72_p1 = scmp.ne.s32.totalorder %s1236_s20, %s1232_s19 }
   0xa   : > { %p73_p2 = scmp.eq.s32.totalorder %s1248_s23, 0  ;;  %p1004_p4 = scmp.lt.s32.totalorder %s1248_s23, 2 }
   0xb   : > { %s1610_s24 = smov (%p30_p0, %s29_s24), 0  ;;  %s222_s27 = sand.u32 1, %s1248_s23  }
   0xc   : > { %p74_p3 = por %p73_p2, %p72_p1  ;;  %s62_s26 = ssub.s32 %s1244_s22, %s1610_s24 }
   0xd   : > { %p63_p5 = scmp.eq.s32.totalorder %s62_s26, 0  ;;  %s224_s28 = sand.u32 1, %s1236_s20  }
   0xe   : > { %s899_s29 = sshll.u32 %s1244_s22, 7  ;;  %s898_s6 = sshll.u32 %s224_s28, 3 }
   0xf   : > { %s1330_s30 = scalar_select %p63_p5, %s1236_s20, %s65_s25  }
  0x10   : > { %s1595_s1 = sld [smem:[#allocation13_spill]]  ;;  %p1337_p6 = pnand %p1004_p4, %p74_p3 }
  0x11   : > { %s226_s11 = scalar_lea.vmem [#allocation6], %s898_s6  ;;  %s1341_s13 = sshll.u32 %s224_s28, 6 }
  0x12   : > { %s233_s12 = sshll.u32 %s226_s11, 4  ;;  %s1345_s14 = scalar_lea.sflag [#allocation7], %s222_s27  ;;  %s1343_s12 = int_to_ptr.vmem [resolvable:$true] %s233_s12 }
  0x13   : > { %p1078_p8 = pneg %p1337_p6 }
  0x16   : > { %s1335_s9 = scalar_lea.hbm %s1595_s1, %s899_s29  ;;  %s1081_s25 = scalar_lea.hbm %s1595_s1, 256 }
  0x17   : > { %s1076_s15 = scalar_lea.hbm %s1335_s9, 128  ;;  %p1082_p11 = scmp.lt.u32.totalorder %s1335_s9, %s1595_s1 }
  0x18   : > { %p1077_p7 = scmp.ne.s32.totalorder %s1335_s9, %s1076_s15  ;;  %p1083_p12 = scmp.lt.u32.totalorder %s1081_s25, %s1076_s15 }
  0x19   : > { %p1085_p0 = scmp.lt.u32.totalorder %s1076_s15, %s1335_s9 }
  0x1a   : > { %p1079_p9 = pnand %p1078_p8, %p1077_p7  ;;  %p1084_p13 = por %p1083_p12, %p1082_p11 }
  0x1c   : > { %p1080_p10 = pneg %p1079_p9  ;;  %p1086_p1 = por %p1085_p0, %p1084_p13 }
  0x1e   : > { %p1087_p2 = pnand %p1086_p1, %p1080_p10 }
  0x20   : > { %1090 = shalt.err (!%p1087_p2)
}
  0x21   : > { %s1091_s27 = scalar_lea.vmem %s1343_s12, 128  ;;  %s1250_s28 = smov [#allocation6]  }
  0x22   : > { %p1092_p3 = scmp.ne.s32.totalorder %s1343_s12, %s1091_s27  ;;  %s1096_s6 = sshll.u32 %s1250_s28, 4  ;;  %s1097_s6 = int_to_ptr.vmem [resolvable:$false] %s1096_s6 }
  0x23   : > { %s1098_s7 = scalar_lea.vmem %s1097_s6, 256  ;;  %p1099_p7 = scmp.lt.s32.totalorder %s1343_s12, %s1097_s6 }
  0x24   : > { %p1094_p4 = pnand %p1092_p3, %p1078_p8  ;;  %p1100_p9 = scmp.lt.s32.totalorder %s1098_s7, %s1091_s27 }
  0x26   : > { %p1095_p5 = pneg %p1094_p4  ;;  %p1101_p11 = por %p1100_p9, %p1099_p7 }
  0x28   : > { %p1102_p12 = pnand %p1101_p11, %p1095_p5 }
  0x2a   : > { %1105 = shalt.err (!%p1102_p12)
}
  0x2b   : > { %999 = dma.hbm_to_vmem [thread:$0]  (!%p1337_p6), %s1335_s9, 128, %s1343_s12, %s1345_s14  }
  0x2c   : > { %s929_s8 = sshll.u32 %s1244_s22, 10  ;;  %s244_s11 = scalar_lea.vmem [#allocation8], %s1341_s13 }
  0x2d   : > { %s251_s15 = sshll.u32 %s244_s11, 4  ;;  %s1376_s16 = sadd.s32 4294967295, %s1248_s23   ;;  %s1389_s15 = int_to_ptr.vmem [resolvable:$true] %s251_s15 }
  0x2e   : > { %p78_p10 = scmp.ne.s32.totalorder %s1232_s19, %s1228_s18  ;;  %p1591_p13 = scmp.eq.s32.totalorder %s1376_s16, 0 }
  0x2f   : > { %p895_p0 = scmp.ge.s32.totalorder %s1248_s23, 1  ;;  %p193_p1 = scmp.lt.s32.totalorder %s1248_s23, 3 }
  0x30   : > { %p1385_p2 = por %p1591_p13, %p78_p10  ;;  %s1251_s12 = smov [#allocation3]  }
  0x31   : > { %p1391_p3 = pnand %p895_p0, %p193_p1  ;;  %s208_s13 = sshll.u32 %s1251_s12, 4  ;;  %s1402_s13 = int_to_ptr.vmem [resolvable:$true] %s208_s13 }
  0x32   : > { %s1597_s17 = scalar_select %p1385_p2, 1, 0 }
  0x33   : > { %s1598_s9 = scalar_select %p1391_p3, 1, 0 }
  0x34   : > { %p992_p4 = pneg %p1391_p3  ;;  %s1400_s26 = scalar_lea.hbm %s1587_s2, %s929_s8 }
  0x35   : > { %s1106_s27 = scalar_lea.hbm %s1400_s26, 1024  ;;  %s1111_s7 = scalar_lea.hbm %s1587_s2, 2048 }
  0x36   : > { %p1406_p5 = pnand %p992_p4, %p1591_p13  ;;  %p1107_p7 = scmp.ne.s32.totalorder %s1400_s26, %s1106_s27 }
  0x37   : > { %p1112_p12 = scmp.lt.u32.totalorder %s1400_s26, %s1587_s2  ;;  %p1113_p10 = scmp.lt.u32.totalorder %s1111_s7, %s1106_s27 }
  0x38   : > { %p1109_p9 = pnand %p1107_p7, %p1078_p8  ;;  %p1115_p1 = scmp.lt.u32.totalorder %s1106_s27, %s1400_s26 }
  0x39   : > { %p1114_p0 = por %p1113_p10, %p1112_p12 }
  0x3a   : > { %p1110_p11 = pneg %p1109_p9 }
  0x3b   : > { %p1116_p4 = por %p1115_p1, %p1114_p0 }
  0x3d   : > { %p1117_p13 = pnand %p1116_p4, %p1110_p11 }
  0x3f   : > { %1120 = shalt.err (!%p1117_p13)
}
  0x40   : > { %s1121_s12 = scalar_lea.vmem %s1389_s15, 1024  ;;  %s1252_s18 = smov [#allocation8]  }
  0x41   : > { %p1122_p7 = scmp.ne.s32.totalorder %s1389_s15, %s1121_s12  ;;  %s1126_s25 = sshll.u32 %s1252_s18, 4  ;;  %s1127_s25 = int_to_ptr.vmem [resolvable:$false] %s1126_s25 }
  0x42   : > { %s1128_s28 = scalar_lea.vmem %s1127_s25, 2048  ;;  %p1129_p3 = scmp.lt.s32.totalorder %s1389_s15, %s1127_s25 }
  0x43   : > { %p1124_p9 = pnand %p1122_p7, %p1078_p8  ;;  %p1130_p12 = scmp.lt.s32.totalorder %s1128_s28, %s1121_s12 }
  0x45   : > { %p1125_p2 = pneg %p1124_p9  ;;  %p1131_p10 = por %p1130_p12, %p1129_p3 }
  0x47   : > { %p1132_p0 = pnand %p1131_p10, %p1125_p2 }
  0x49   : > { %1135 = shalt.err (!%p1132_p0)
}
  0x4a   : > { %s1253_s27 = smov 128   ;;  %s1254_s6 = smov 8  }
  0x4b   : > { %1002 = dma.hbm_to_vmem [thread:$0]  (!%p1337_p6), %s1400_s26, 1024, %s1389_s15, %s1345_s14, %s1253_s27, %s1253_s27, %s1254_s6  }
  0x4c   : > { %s1136_s11 = scalar_lea.hbm %s1585_s0, 256  ;;  %p1138_p13 = pneg %p1406_p5 }
  0x4d   : > { %p1137_p8 = scmp.ne.s32.totalorder %s1585_s0, %s1136_s11  ;;  %p1143_p11 = scmp.lt.u32.totalorder %s1136_s11, %s1585_s0 }
  0x4f   : > { %p1139_p2 = pnand %p1138_p13, %p1137_p8 }
  0x51   : > { %p1140_p3 = pneg %p1139_p2 }
  0x53   : > { %p1145_p1 = pnand %p1143_p11, %p1140_p3 }
  0x55   : > { %1148 = shalt.err (!%p1145_p1)
}
  0x56   : > { %s1149_s10 = scalar_lea.vmem %s1402_s13, 256  ;;  %p1157_p9 = scmp.lt.s32.totalorder %s1402_s13, %s1402_s13 }
  0x57   : > { %p1150_p6 = scmp.ne.s32.totalorder %s1402_s13, %s1149_s10  ;;  %p1158_p12 = scmp.lt.s32.totalorder %s1149_s10, %s1149_s10 }
  0x59   : > { %p1152_p4 = pnand %p1150_p6, %p1138_p13  ;;  %p1159_p10 = por %p1158_p12, %p1157_p9 }
  0x5b   : > { %p1153_p7 = pneg %p1152_p4 }
  0x5d   : > { %p1160_p0 = pnand %p1159_p10, %p1153_p7 }
  0x5f   : > { %1163 = shalt.err (!%p1160_p0)
}
  0x60   : > { %995 = dma.hbm_to_vmem [thread:$0]  (!%p1406_p5), %s1585_s0, 256, %s1402_s13, [#allocation4], %s1253_s27, %s1253_s27, %s1254_s6  }
  0x61   : > { %p1600_p8 = scmp.ne.s32.totalorder %s1598_s9, 0 }
  0x62   : > { %p1601_p2 = scmp.eq.s32.totalorder (!%p1600_p8), %s1376_s16, 0 }
  0x63   : > { %277 = sbr.rel (%p1600_p8) target bundleno = 773 (0x305), region = 40 }
  0x6a   : > { %1215 = dma.done.wait (%p1601_p2), [#allocation4], 256   ;;  %p1602_p13 = pmov %p1601_p2 }
  0x6b   : > { %s283_s15 = sand.u32 1, %s1376_s16   ;;  %s285_s26 = sand.u32 1, %s1232_s19  }
  0x6c   : > { %1217 = vsyncadd (%p1602_p13), [#allocation4], 4294967040  ;;  %s1463_s29 = sshll.u32 %s285_s26, 3  ;;  %s284_s28 = scalar_lea.sflag [#allocation7], %s283_s15 }
  0x6d   : > { %s287_s7 = scalar_lea.vmem [#allocation6], %s1463_s29  ;;  %p1603_p5 = scmp.ne.s32.totalorder %s1597_s17, 0 }
  0x6f   : > { %1219 = dma.done.wait (%p1603_p5), %s284_s28, 1152  }
  0x70   : > { %1221 = vsyncadd (%p1603_p5), %s284_s28, 4294966144  ;;  %s906_s9 = sshll.u32 %s285_s26, 6  ;;  %p332_p3 = scmp.lt.s32.totalorder %s1240_s21, 1 }
  0x71   : > { %s1482_s10 = scalar_lea.vmem [#allocation8], %s906_s9  ;;  %p909_p11 = scmp.ne.s32.totalorder %s1240_s21, 0 }
  0x72   : > { %s333_s13 = scalar_select %p332_p3, %s1240_s21, 1 }
  0x73   : > { %343 = sbr.rel (%p909_p11) target bundleno = 122 (0x7a), region = 56  ;;  %v344_v0 = vld [vmem:[#allocation3] sm:$0xff] (!%p909_p11)  ;;  %vm346_vm0 = vcmask (!%p909_p11), 261120   ;;  %v345_v1 = vld [vmem:[#allocation3 + $0x8] sm:$0xff] (!%p909_p11) }
  0x74   : > { %s907_s27 = sshll.u32 %s333_s13, 1  ;;  %347 = vst.msk [vmem:[#allocation2] sm:$0xff] (!%p909_p11), %vm346_vm0, %v344_v0  ;;  %348 = vst.msk [vmem:[#allocation2 + $0x8] sm:$0xff] (!%p909_p11), %vm346_vm0, %v345_v1 }
  0x75   : > { %s1475_s11 = scalar_lea.vmem %s1588_s3, %s907_s27  ;;  %s1480_s25 = scalar_lea.vmem %s1589_s4, %s907_s27 }
  0x7a PF: > { %v913_v2 = vld [vmem:[%s1482_s10 + $0x20] sm:$0xff]  ;;  %v914_v3 = vld [vmem:[%s1482_s10 + $0x28] sm:$0xff]  ;;  %v915_v4 = vld [vmem:[%s1482_s10 + $0x30] sm:$0xff]  ;;  %v352_v5 = vlaneseq  ;;  %vm370_vm1 = vcmask 1040384   ;;  %vm390_vm2 = vcmask 1041408   ;;  %vm410_vm3 = vcmask 1042432  }
  0x7b   : > { %v972_v6 = vpack.c.bf16 %v914_v3, %v913_v2  ;;  %v916_v7 = vld [vmem:[%s1482_s10 + $0x38] sm:$0xff]  ;;  %v518_v10 = vld [vmem:[%s1482_s10] sm:$0xff]  ;;  %v519_v11 = vld [vmem:[%s1482_s10 + $0x8] sm:$0xff]  ;;  %vm430_vm4 = vcmask 1043456   ;;  %vm450_vm5 = vcmask 1044480   ;;  %vm470_vm6 = vcmask 1045504  }
  0x7c   : > { %v976_v8 = vpack.c.bf16 %v916_v7, %v915_v4  ;;  %v353_v9 = vshrl.u32 %v352_v5, 7  ;;  %v351_v12 = vld [vmem:[%s287_s7] sm:$0xff]  ;;  %v964_v13 = vpack.c.bf16 %v519_v11, %v518_v10  ;;  %vm490_vm7 = vcmask 1046528   ;;  %p924_p1 = scmp.ne.s32.totalorder %s1240_s21, 1 }
  0x7d   : > { %973 = vmatprep.subr.bf16.mxu1 %v972_v6  ;;  %v1491_v18 = vld [vmem:[#allocation2] sm:$0xff]  ;;  %v1493_v20 = vld [vmem:[#allocation2 + $0x8] sm:$0xff]  ;;  %vm527_vm8 = vcmask 261120   ;;  %vm762_vm9 = vcmask (!%p924_p1), 261127   ;;  %vm764_vm10 = vcmask (!%p924_p1), 253952  }
  0x7e   : > { %975 = vmatpush3.bf16.msra.mxu1 %v972_v6  ;;  %v354_v14 = vsub.s32 0, %v353_v9  ;;  %v362_v15 = vsub.s32 1, %v353_v9  ;;  %v382_v16 = vsub.s32 2, %v353_v9  ;;  %v402_v17 = vsub.s32 3, %v353_v9  ;;  %965 = vmatprep.subr.bf16.mxu0 %v964_v13  ;;  %v520_v11 = vld [vmem:[%s1482_s10 + $0x10] sm:$0xff] }
  0x7f   : > { %977 = vmatprep.subr.bf16.mxu1 %v976_v8  ;;  %v422_v19 = vsub.s32 4, %v353_v9  ;;  %967 = vmatpush3.bf16.msra.mxu0 %v964_v13  ;;  %v442_v25 = vsub.s32 5, %v353_v9  ;;  %v462_v26 = vsub.s32 6, %v353_v9  ;;  %v482_v30 = vsub.s32 7, %v353_v9 }
  0x80   : > { %v355_v21 = vrot.slane %v351_v12, %v354_v14  ;;  %v363_v22 = vrot.slane %v351_v12, %v362_v15  ;;  %v383_v23 = vrot.slane %v351_v12, %v382_v16  ;;  %v403_v24 = vrot.slane %v351_v12, %v402_v17 }
  0x81   : > { %v423_v29 = vrot.slane %v351_v12, %v422_v19  ;;  %v443_v42 = vrot.slane %v351_v12, %v442_v25  ;;  %v463_v49 = vrot.slane %v351_v12, %v462_v26  ;;  %v483_v50 = vrot.slane %v351_v12, %v482_v30  ;;  %v521_v12 = vld [vmem:[%s1482_s10 + $0x18] sm:$0xff] }
  0x82   : > { %979 = vmatpush3.bf16.msra.mxu1 %v976_v8  ;;  %v364_v27 = vmul.f32 0.0, %v363_v22  ;;  %v365_v28 = vmul.f32 %v363_v22, %v1491_v18  ;;  %v356_v31 = vmul.f32 %v355_v21, %v1491_v18  ;;  %v366_v32 = vmul.f32 %v363_v22, %v1493_v20 }
  0x83   : > { %v384_v33 = vmul.f32 0.0, %v383_v23  ;;  %v385_v34 = vmul.f32 %v383_v23, %v1491_v18  ;;  %v404_v37 = vmul.f32 0.0, %v403_v24  ;;  %v405_v38 = vmul.f32 %v403_v24, %v1491_v18 }
  0x84   : > { %v371_v35 = vrot.slane %v364_v27, 7  ;;  %v372_v36 = vrot.slane %v365_v28, 7  ;;  %v386_v39 = vmul.f32 %v383_v23, %v1493_v20  ;;  %v406_v44 = vmul.f32 %v403_v24, %v1493_v20 }
  0x85   : > { %v391_v40 = vrot.slane %v384_v33, 6  ;;  %v392_v41 = vrot.slane %v385_v34, 6  ;;  %v411_v45 = vrot.slane %v404_v37, 5  ;;  %v412_v46 = vrot.slane %v405_v38, 5 }
  0x86   : > { %v373_v43 = vsel %vm370_vm1, %v371_v35, %v372_v36  ;;  %v374_v51 = vrot.slane %v366_v32, 7  ;;  %v424_v53 = vmul.f32 0.0, %v423_v29  ;;  %v425_v54 = vmul.f32 %v423_v29, %v1491_v18 }
  0x87   : > { %v378_v47 = vadd.f32 %v373_v43, %v356_v31  ;;  %v393_v48 = vsel %vm390_vm2, %v391_v40, %v392_v41  ;;  %v413_v52 = vsel %vm410_vm3, %v411_v45, %v412_v46  ;;  %v394_v55 = vrot.slane %v386_v39, 6 }
  0x88   : > { %v444_v57 = vmul.f32 0.0, %v443_v42  ;;  %v445_v58 = vmul.f32 %v443_v42, %v1491_v18  ;;  %v357_v59 = vmul.f32 %v355_v21, %v1493_v20  ;;  %v414_v60 = vrot.slane %v406_v44, 5 }
  0x89   : > { %v398_v56 = vadd.f32 %v393_v48, %v378_v47  ;;  %v431_v61 = vrot.slane %v424_v53, 4  ;;  %v432_v62 = vrot.slane %v425_v54, 4  ;;  %v426_v0 = vmul.f32 %v423_v29, %v1493_v20 }
  0x8a   : > { %v451_v1 = vrot.slane %v444_v57, 3  ;;  %v452_v2 = vrot.slane %v445_v58, 3  ;;  %v375_v3 = vsel %vm370_vm1, %v371_v35, %v374_v51  ;;  %v464_v5 = vmul.f32 0.0, %v463_v49 }
  0x8b   : > { %v418_v63 = vadd.f32 %v413_v52, %v398_v56  ;;  %v433_v4 = vsel %vm430_vm4, %v431_v61, %v432_v62  ;;  %v465_v6 = vmul.f32 %v463_v49, %v1491_v18  ;;  %v395_v7 = vsel %vm390_vm2, %v391_v40, %v394_v55 }
  0x8c   : > { %v446_v9 = vmul.f32 %v443_v42, %v1493_v20  ;;  %v453_v10 = vsel %vm450_vm5, %v451_v1, %v452_v2  ;;  %v415_v13 = vsel %vm410_vm3, %v411_v45, %v414_v60  ;;  %v471_v14 = vrot.slane %v464_v5, 2 }
  0x8d   : > { %v438_v8 = vadd.f32 %v433_v4, %v418_v63  ;;  %v472_v15 = vrot.slane %v465_v6, 2  ;;  %v484_v16 = vmul.f32 0.0, %v483_v50  ;;  %v434_v17 = vrot.slane %v426_v0, 4  ;;  %v917_v63 = vld [vmem:[%s1475_s11 + $0x1] ss:$0 sm:$0xff] }
  0x8e   : > { %v466_v21 = vmul.f32 %v463_v49, %v1493_v20  ;;  %v485_v22 = vmul.f32 %v483_v50, %v1491_v18  ;;  %v379_v25 = vadd.f32 %v375_v3, %v357_v59  ;;  %v968_v26 = vpack.c.bf16 %v521_v12, %v520_v11  ;;  %v910_v12 = vld [vmem:[%s1475_s11] ss:$0 sm:$0xff] }
  0x8f   : > { %v458_v19 = vadd.f32 %v453_v10, %v438_v8  ;;  %v473_v23 = vsel %vm470_vm6, %v471_v14, %v472_v15  ;;  %v491_v24 = vrot.slane %v484_v16, 1  ;;  %v454_v27 = vrot.slane %v446_v9, 3 }
  0x90   : > { %v486_v29 = vmul.f32 %v483_v50, %v1493_v20  ;;  %v492_v30 = vrot.slane %v485_v22, 1  ;;  %v399_v31 = vadd.f32 %v395_v7, %v379_v25  ;;  %969 = vmatprep.subr.bf16.mxu0 %v968_v26  ;;  %v435_v32 = vsel %vm430_vm4, %v431_v61, %v434_v17 }
  0x91   : > { %v478_v28 = vadd.f32 %v473_v23, %v458_v19  ;;  %v474_v33 = vrot.slane %v466_v21, 2  ;;  %971 = vmatpush3.bf16.msra.mxu0 %v968_v26  ;;  %v455_v37 = vsel %vm450_vm5, %v451_v1, %v454_v27 }
  0x92   : > { %v493_v34 = vsel %vm490_vm7, %v491_v24, %v492_v30  ;;  %v419_v36 = vadd.f32 %v415_v13, %v399_v31  ;;  %v494_v38 = vrot.slane %v486_v29, 1 }
  0x93   : > { %v498_v35 = vadd.f32 %v493_v34, %v478_v28  ;;  %v475_v41 = vsel %vm470_vm6, %v471_v14, %v474_v33 }
  0x94   : > { %v439_v40 = vadd.f32 %v435_v32, %v419_v36  ;;  %v495_v44 = vsel %vm490_vm7, %v491_v24, %v494_v38 }
  0x95   : > { %v500_v39 = vmul.f32 %v498_v35, %v498_v35 }
  0x96   : > { %v459_v43 = vadd.f32 %v455_v37, %v439_v40  ;;  %v922_v40 = vld [vmem:[%s1480_s25] ss:$0 sm:$0xff] }
  0x97   : > { %v502_v42 = vmul.f32 %v500_v39, %v498_v35 }
  0x98   : > { %v479_v46 = vadd.f32 %v475_v41, %v459_v43 }
  0x99   : > { %v504_v45 = vmul.f32 0.044715, %v502_v42  ;;  %v923_v42 = vld [vmem:[%s1480_s25 + $0x1] ss:$0 sm:$0xff] }
  0x9a   : > { %v499_v48 = vadd.f32 %v495_v44, %v479_v46 }
  0x9b   : > { %v506_v47 = vadd.f32 %v504_v45, %v498_v35 }
  0x9c   : > { %v501_v50 = vmul.f32 %v499_v48, %v499_v48 }
  0x9d   : > { %v508_v49 = vmul.f32 0.7978846, %v506_v47 }
  0x9e   : > { %v503_v51 = vmul.f32 %v501_v50, %v499_v48 }
  0x9f   : > { %1060 = vtanh.f32 %v508_v49 }
  0xa0   : > { %v505_v52 = vmul.f32 0.044715, %v503_v51 }
  0xa2   : > { %v507_v53 = vadd.f32 %v505_v52, %v499_v48 }
  0xa4   : > { %v509_v54 = vmul.f32 0.7978846, %v507_v53 }
  0xa6   : > { %1062 = vtanh.f32 %v509_v54 }
  0xa9   : > { %v1061_v55 = vpop.eup %1060 }
  0xaa   : > { %v512_v56 = vadd.f32 1.0, %v1061_v55 }
  0xac   : > { %v514_v57 = vmul.f32 0.5, %v512_v56 }
  0xae   : > { %v516_v58 = vmul.f32 %v514_v57, %v498_v35 }
  0xb0   : > { %961 = vmatprep.mubr.msk.f32.mxu1 %vm527_vm8, %v516_v58  ;;  %950 = vmatprep.mubr.msk.f32.mxu0 %vm527_vm8, %v516_v58  ;;  %v1063_v59 = vpop.eup %1062 }
  0xb1   : > { %v513_v60 = vadd.f32 1.0, %v1063_v59 }
  0xb3   : > { %v515_v61 = vmul.f32 0.5, %v513_v60 }
  0xb5   : > { %v517_v62 = vmul.f32 %v515_v61, %v499_v48 }
  0xb7   : > { %962 = vmatmul.mubr.msk.f32.vlgmr.msra.gmra.mrb[0].mxu1 %vm527_vm8, %v517_v62  ;;  %951 = vmatmul.mubr.msk.f32.vlgmr.msra.gmra.mrb[0].mxu0 %vm527_vm8, %v517_v62 }
 0x18a   : > { %v963_v0 = vpop.f32.mrb[0].mxu1  ;;  %v952_v1 = vpop.f32.mrb[0].mxu0 }
 0x18b   : > { %v691_v2 = vadd.f32 %v963_v0, %v917_v63  ;;  %v685_v3 = vpop.f32.mrb[1].mxu1  ;;  %v600_v4 = vpop.f32.mrb[1].mxu0  ;;  %v606_v13 = vadd.f32 %v952_v1, %v910_v12 }
 0x18c   : > { %v686_v5 = vadd.f32 %v917_v63, %v685_v3  ;;  %v601_v14 = vadd.f32 %v910_v12, %v600_v4 }
 0x18d   : > { %v921_v6 = vmul.f32 -1.442695, %v691_v2 }
 0x18e   : > { %v920_v7 = vmul.f32 -1.442695, %v686_v5 }
 0x18f   : > { %1064 = vpow2.f32 %v921_v6 }
 0x190   : > { %1066 = vpow2.f32 %v920_v7 }
 0x199   : > { %v1065_v8 = vpop.eup %1064 }
 0x19a   : > { %v1067_v9 = vpop.eup %1066  ;;  %v701_v10 = vadd.f32 1.0, %v1065_v8 }
 0x19b   : > { %v700_v11 = vadd.f32 1.0, %v1067_v9 }
 0x19c   : > { %1068 = vrcp.f32 %v701_v10 }
 0x19d   : > { %1070 = vrcp.f32 %v700_v11 }
 0x1a6   : > { %v1069_v15 = vpop.eup %1068 }
 0x1a7   : > { %v1071_v16 = vpop.eup %1070  ;;  %v707_v17 = vmul.f32 %v1069_v15, %v606_v13 }
 0x1a8   : > { %v706_v19 = vmul.f32 %v1071_v16, %v601_v14 }
 0x1a9   : > { %v709_v23 = vadd.f32 %v707_v17, %v1493_v20 }
 0x1aa   : > { %v708_v21 = vadd.f32 %v706_v19, %v1491_v18 }
 0x1ab   : > { %v713_v24 = vsel %vm527_vm8, %v709_v23, 0.0 }
 0x1ac   : > { %v710_v22 = vsel %vm527_vm8, %v708_v21, 0.0 }
 0x1ad   : > { %711 = vadd.xlane.f32.xlu0 %v710_v22 }
 0x1b1   : > { %714 = vadd.xlane.f32.xlu0 %v713_v24 }
 0x23a   : > { %v712_v25 = vpop.xlane.xlu0 %711 }
 0x23b   : > { %v717_v26 = vmul.f32 0.03125, %v712_v25 }
 0x23d   : > { %v719_v27 = vsub.f32 %v708_v21, %v717_v26 }
 0x23e   : > { %v715_v28 = vpop.xlane.xlu0 %714 }
 0x23f   : > { %v718_v29 = vmul.f32 0.03125, %v715_v28  ;;  %v721_v30 = vmul.f32 %v719_v27, %v719_v27 }
 0x241   : > { %v720_v31 = vsub.f32 %v709_v23, %v718_v29  ;;  %v723_v32 = vsel %vm527_vm8, %v721_v30, 0.0 }
 0x242   : > { %724 = vadd.xlane.f32.xlu1 %v723_v32 }
 0x243   : > { %v722_v18 = vmul.f32 %v720_v31, %v720_v31 }
 0x245   : > { %v726_v33 = vsel %vm527_vm8, %v722_v18, 0.0 }
 0x246   : > { %727 = vadd.xlane.f32.xlu1 %v726_v33 }
 0x2cf   : > { %v725_v20 = vpop.xlane.xlu1 %724 }
 0x2d0   : > { %v729_v34 = vmul.f32 0.03125, %v725_v20 }
 0x2d2   : > { %v731_v35 = vadd.f32 1e-05, %v729_v34 }
 0x2d3   : > { %v728_v36 = vpop.xlane.xlu1 %727 }
 0x2d4   : > { %1072 = vrsqrt.f32 %v731_v35  ;;  %v730_v37 = vmul.f32 0.03125, %v728_v36 }
 0x2d6   : > { %v732_v38 = vadd.f32 1e-05, %v730_v37 }
 0x2d8   : > { %1074 = vrsqrt.f32 %v732_v38 }
 0x2de   : > { %v1073_v39 = vpop.eup %1072 }
 0x2df   : > { %v735_v41 = vmul.f32 %v1073_v39, %v719_v27 }
 0x2e1   : > { %v742_v43 = vmul.f32 %v922_v40, %v735_v41 }
 0x2e2   : > { %v1075_v44 = vpop.eup %1074 }
 0x2e3   : > { %v749_v45 = vadd.f32 %v923_v42, %v742_v43  ;;  %v736_v46 = vmul.f32 %v1075_v44, %v720_v31  ;;  %756 = sbr.rel (%p924_p1) target bundleno = 748 (0x2ec), region = 60 }
 0x2e5   : > { %751 = vst.msk [vmem:[#allocation2] sm:$0xff] %vm527_vm8, %v749_v45  ;;  %v743_v47 = vmul.f32 %v922_v40, %v736_v46 }
 0x2e6   : > { %763 = vst.msk [vmem:[#allocation9 - $0x7] sm:$0x80] (!%p924_p1), %vm762_vm9, %v749_v45 }
 0x2e7   : > { %v750_v48 = vadd.f32 %v923_v42, %v743_v47 }
 0x2e9   : > { %752 = vst.msk [vmem:[#allocation2 + $0x8] sm:$0xff] %vm527_vm8, %v750_v48  ;;  %v759_v49 = vrot.slane (!%p924_p1), %v750_v48, 7 }
 0x2eb   : > { %765 = vst.msk [vmem:[#allocation9 + $0x1] sm:$0x1] %vm764_vm10, %v759_v49 }
 0x2ec PF: > { %p1006_p6 = scmp.eq.s32.totalorder %s1376_s16, 1  ;;  %s1255_s17 = smov [#allocation9]  }
 0x2ed   : > { %s775_s1 = sshll.u32 %s1255_s17, 4  ;;  %s776_s1 = int_to_ptr.vmem [resolvable:$true] %s775_s1 }
 0x2ee   : > { %s1164_s14 = scalar_lea.vmem %s776_s1, 32  ;;  %p1171_p12 = scmp.lt.s32.totalorder %s776_s1, %s776_s1 }
 0x2ef   : > { %p1165_p4 = scmp.ne.s32.totalorder %s776_s1, %s1164_s14  ;;  %p1172_p10 = scmp.lt.s32.totalorder %s1164_s14, %s1164_s14 }
 0x2f1   : > { %p1166_p7 = pnand %p1165_p4, %p1006_p6  ;;  %p1173_p0 = por %p1172_p10, %p1171_p12 }
 0x2f3   : > { %p1167_p9 = pneg %p1166_p7 }
 0x2f5   : > { %p1174_p8 = pnand %p1173_p0, %p1167_p9 }
 0x2f7   : > { %1177 = shalt.err (!%p1174_p8)
}
 0x2f8   : > { %s1178_s26 = scalar_lea.hbm %s1590_s5, 32 }
 0x2f9   : > { %p1179_p2 = scmp.ne.s32.totalorder %s1590_s5, %s1178_s26  ;;  %p1184_p3 = scmp.lt.u32.totalorder %s1178_s26, %s1590_s5 }
 0x2fb   : > { %p1180_p13 = pnand %p1179_p2, %p1006_p6 }
 0x2fd   : > { %p1181_p5 = pneg %p1180_p13 }
 0x2ff   : > { %p1186_p11 = pnand %p1184_p3, %p1181_p5 }
 0x301   : > { %1189 = shalt.err (!%p1186_p11)
}
 0x302   : > { %989 = dma.vmem_to_hbm [thread:$0]  (%p1006_p6), %s776_s1, 32, %s1590_s5, [#allocation5]  }
 0x303   : > { %1223 = dma.done.wait (%p1006_p6), [#allocation5], 32  }
 0x304   : > { %1225 = vsyncadd (%p1006_p6), [#allocation5], 4294967264 }
 0x305 PF: > { %s20_s23 = sadd.s32 1, %s1248_s23   ;;  %s1604_s18 = smov %s1232_s19 }
 0x306   : > { %p17_p1 = scmp.ge.s32.totalorder %s20_s23, 4   ;;  %s1605_s19 = smov %s1236_s20 }
 0x307   : > { %s1606_s20 = smov %s1330_s30  ;;  %s1607_s21 = smov %s1244_s22 }
 0x308   : > { %s1608_s22 = smov %s1610_s24  ;;  %19 = sbr.rel (!%p17_p1) target bundleno = 8 (0x8), region = 110 }
 0x30f   :  { %788 = vsyncpa [#allocation4], 1 }
 0x310   :  { %790 = vsyncpa [#allocation4 + $0x1], 1 }
 0x311   :  { %791 = vsyncpa [#allocation7], 1 }
 0x312   :  { %793 = vsyncpa [#allocation7 + $0x1], 1 }
 0x313   :  { %794 = vsyncpa [#allocation5], 1 }
 0x314   :  { %796 = vsyncpa [#allocation5 + $0x1], 1 }

</bundles_post_ra>
